<compile_context>
chip_gen: v5e
topology: v5e:2x2
jax: 0.10.0
libtpu: 0.0.40
codegen_flags: <defaults>
</compile_context>

<pallas_src>
import jax
import jax.numpy as jnp
from jax.experimental import pallas as pl
from jax.experimental.pallas import tpu as pltpu

LANE = 128        # padded hidden / class width (lane-dense)
SUBLANE = 8       # padded batch (sublane-dense)
VOCAB_PAD = 16    # vocab padded to 16 sublanes (enough for the one-hot matmul)


def rnn_classify_kernel(ids_ref, eproj_ref, whh_ref, wcls_ref, bcls_ref, out_ref):
    """Fused one-hot embedding matmul + tanh-RNN recurrence + classifier.

    ids_ref:   (S*BP, 1) int32, VMEM — token ids, TIME-major (row = t*BP + b)
    eproj_ref: (VP, HP)  f32,   VMEM — E @ W_ih^T + (b_ih + b_hh), zero-padded
    whh_ref:   (HP, HP)  f32,   VMEM — W_hh^T, zero-padded
    wcls_ref:  (HP, CP)  f32,   VMEM — W_cls^T, zero-padded
    bcls_ref:  (1, CP)   f32,   VMEM
    out_ref:   (BP, CP)  f32,   VMEM — padded logits (lane-dense store)
    """
    BP = out_ref.shape[0]
    BS = ids_ref.shape[0]
    S = BS // BP
    VP = eproj_ref.shape[0]

    # All timestep inputs in one shot: a one-hot matmul replaces S*BP scalar
    # gathers + concatenates. The MXU is otherwise idle here, so this is
    # effectively free and keeps the serial loop free of vst/XLU traffic.
    ids = ids_ref[...]                                              # (BS, 1)
    onehot = (jax.lax.broadcasted_iota(jnp.int32, (BS, VP), 1) == ids
              ).astype(jnp.float32)                                 # (BS, VP)
    x_all = jnp.dot(onehot, eproj_ref[...],
                    preferred_element_type=jnp.float32)             # (BS, HP)

    whh = whh_ref[...]                                              # hoisted

    # t = 0: h_{-1} = 0, so h_0 = tanh(x_0) — skips one matmul.
    h = jnp.tanh(x_all[0:BP, :])

    # Fully unrolled serial recurrence. Each step reads a static, sublane-
    # aligned (BP, HP) slice of the precomputed block (time-major layout).
    # TODO(synk): the dependent-chain latency could be shaved further by
    # holding W_hh in the MXU across steps (pltpu.matmul_push_rhs /
    # matmul_acc_lhs / matmul_pop) and/or a bf16 recurrence dot on v6e/v7x.
    for t in range(1, S):
        x_t = x_all[t * BP:(t + 1) * BP, :]
        h = jnp.tanh(x_t + jnp.dot(h, whh, preferred_element_type=jnp.float32))

    logits = (jnp.dot(h, wcls_ref[...], preferred_element_type=jnp.float32)
              + bcls_ref[...])
    out_ref[...] = logits.astype(out_ref.dtype)


def init_params(vocab_size, vector_dim, num_classes=6, seed=0):
    """Deterministic synthetic parameters matching TorchModel.__init__ shapes."""
    keys = jax.random.split(jax.random.PRNGKey(seed), 7)
    scale = 1.0 / jnp.sqrt(jnp.float32(vector_dim))

    embedding = jax.random.normal(keys[0], (vocab_size, vector_dim), jnp.float32) * 0.1
    embedding = embedding.at[0].set(0.0)  # padding_idx=0

    # nn.RNN(input_size=20, hidden_size=20): W_ih (H, D), W_hh (H, H), b_ih, b_hh
    w_ih = jax.random.uniform(keys[1], (vector_dim, vector_dim), jnp.float32, -scale, scale)
    w_hh = jax.random.uniform(keys[2], (vector_dim, vector_dim), jnp.float32, -scale, scale)
    b_ih = jax.random.uniform(keys[3], (vector_dim,), jnp.float32, -scale, scale)
    b_hh = jax.random.uniform(keys[4], (vector_dim,), jnp.float32, -scale, scale)

    # nn.Linear(vector_dim, 6): W (6, D), b (6,)
    w_cls = jax.random.uniform(keys[5], (num_classes, vector_dim), jnp.float32, -scale, scale)
    b_cls = jax.random.uniform(keys[6], (num_classes,), jnp.float32, -scale, scale)

    return {
        "embedding": embedding,
        "w_ih_t": w_ih.T,                  # (D, H) for x @ W_ih^T
        "w_hh_t": w_hh.T,                  # (H, H) for h @ W_hh^T
        "b_ih": b_ih.reshape(1, -1),
        "b_hh": b_hh.reshape(1, -1),
        "w_cls_t": w_cls.T,                # (H, C) for h @ W_cls^T
        "b_cls": b_cls.reshape(1, -1),
    }


def prepare_params(params):
    """One-time fold + zero-pad of parameters to lane/sublane-dense tiles."""
    vocab, d = params["embedding"].shape
    h = params["w_hh_t"].shape[0]
    c = params["w_cls_t"].shape[1]
    vp = max(VOCAB_PAD, ((vocab + SUBLANE - 1) // SUBLANE) * SUBLANE)
    hp, cp = LANE, LANE

    # Fold input projection + both biases into the embedding table.
    # Row 0 (padding_idx) = 0 @ W_ih^T + bias = bias, which is exactly what the
    # original formula produces for a padded token.
    bias = (params["b_ih"] + params["b_hh"]).reshape(-1)              # (H,)
    eproj = params["embedding"] @ params["w_ih_t"] + bias             # (vocab, H)
    eproj_p = jnp.zeros((vp, hp), jnp.float32).at[:vocab, :h].set(eproj)  # 2-D

    whh_p = jnp.zeros((hp, hp), jnp.float32).at[:h, :h].set(params["w_hh_t"])
    wcls_p = jnp.zeros((hp, cp), jnp.float32).at[:h, :c].set(params["w_cls_t"])
    bcls_p = jnp.zeros((1, cp), jnp.float32).at[:, :c].set(params["b_cls"][0])

    return {"eproj": eproj_p, "whh": whh_p, "wcls": wcls_p, "bcls": bcls_p,
            "num_classes": c}


def torch_model_forward(token_ids, prepared):
    """Equivalent of TorchModel.forward(x) with y=None → logits (batch, 6)."""
    B, S = token_ids.shape
    BP = ((B + SUBLANE - 1) // SUBLANE) * SUBLANE
    CP = prepared["bcls"].shape[1]

    # Pad batch with token 0 (padding_idx); padded rows are sliced off below.
    # Time-major layout: row t*BP + b, so per-step slices inside the kernel
    # are static and (8,128)-tile aligned.
    ids_p = jnp.zeros((BP, S), jnp.int32).at[:B, :].set(token_ids.astype(jnp.int32))
    ids_tm = ids_p.T.reshape(S * BP, 1)

    vmem = pl.BlockSpec(memory_space=pltpu.MemorySpace.VMEM)

    # Single-block kernel: whole problem (< 100 KiB) is VMEM resident; no grid.
    # TODO(synk): if many independent (batch, seq) instances are run, fold them
    # into one pallas_call with a grid over instances
    # (dimension_semantics=("parallel",)) to amortize dispatch overhead and use
    # both v7x TensorCores.
    logits_p = pl.pallas_call(
        rnn_classify_kernel,
        out_shape=jax.ShapeDtypeStruct((BP, CP), jnp.float32),
        in_specs=[vmem, vmem, vmem, vmem, vmem],
        out_specs=vmem,
    )(ids_tm, prepared["eproj"], prepared["whh"],
      prepared["wcls"], prepared["bcls"])

    return logits_p[:B, :prepared["num_classes"]]
    # TODO(synk): training branch (fu.cross_entropy when y is not None) not
    # implemented; only the y=None inference path is reproduced.


def _reference_forward(token_ids, params):
    """Pure-JAX reference (unpadded, un-folded) for sanity checking."""
    emb = params["embedding"][token_ids]
    B, S, D = emb.shape
    h = jnp.zeros((B, D), jnp.float32)
    bias = params["b_ih"] + params["b_hh"]
    for t in range(S):
        h = jnp.tanh(emb[:, t, :] @ params["w_ih_t"] + h @ params["w_hh_t"] + bias)
    return h @ params["w_cls_t"] + params["b_cls"]


if __name__ == "__main__":
    VOCAB_SIZE = 10     # len(vocab)
    VECTOR_DIM = 20     # vector_idm (RNN input/hidden size = 20)
    NUM_CLASSES = 6
    BATCH, SEQ = 2, 8

    params = init_params(VOCAB_SIZE, VECTOR_DIM, NUM_CLASSES, seed=0)
    prepared = prepare_params(params)

    key = jax.random.PRNGKey(0)
    token_ids = jax.random.randint(key, (BATCH, SEQ), 0, VOCAB_SIZE, dtype=jnp.int32)

    logits = torch_model_forward(token_ids, prepared)
    logits = jax.block_until_ready(logits)

    ref = _reference_forward(token_ids, params)
    assert logits.shape == (BATCH, NUM_CLASSES)
    assert jnp.allclose(logits, ref, atol=1e-4, rtol=1e-4)

    print("KERNEL_OK")
</pallas_src>

<mosaic_0001>
module attributes {stable_mosaic.version = 11 : i64} {
  func.func @rnn_classify_kernel(%arg0: memref<64x1xi32, #tpu.memory_space<vmem>>, %arg1: memref<16x128xf32, #tpu.memory_space<vmem>>, %arg2: memref<128x128xf32, #tpu.memory_space<vmem>>, %arg3: memref<128x128xf32, #tpu.memory_space<vmem>>, %arg4: memref<1x128xf32, #tpu.memory_space<vmem>>, %arg5: memref<8x128xf32, #tpu.memory_space<vmem>>) attributes {dimension_semantics = [], scalar_prefetch = 0 : i64, scratch_operands = 0 : i64, tpu.core_type = #tpu.core_type<tc>} {
    %c0 = arith.constant 0 : index
    %c0_0 = arith.constant 0 : index
    %0 = vector.load %arg0[%c0, %c0_0] : memref<64x1xi32, #tpu.memory_space<vmem>>, vector<64x1xi32>
    %1 = tpu.iota {dimensions = array<i32: 1>} : vector<64x16xi32>
    %2 = vector.broadcast %0 : vector<64x1xi32> to vector<64x16xi32>
    %3 = arith.cmpi eq, %1, %2 : vector<64x16xi32>
    %4 = arith.extui %3 : vector<64x16xi1> to vector<64x16xi32>
    %5 = arith.sitofp %4 : vector<64x16xi32> to vector<64x16xf32>
    %c0_1 = arith.constant 0 : index
    %c0_2 = arith.constant 0 : index
    %6 = vector.load %arg1[%c0_1, %c0_2] : memref<16x128xf32, #tpu.memory_space<vmem>>, vector<16x128xf32>
    %cst = arith.constant dense<0.000000e+00> : vector<64x128xf32>
    %7 = tpu.matmul %5, %6, %cst {dimension_numbers = #tpu.dot_dimension_numbers<[1], [0], [0], [1], [0, 0, 1, 1], [], []>} : vector<64x16xf32>, vector<16x128xf32>, vector<64x128xf32> -> vector<64x128xf32>
    %c0_3 = arith.constant 0 : index
    %c0_4 = arith.constant 0 : index
    %8 = vector.load %arg2[%c0_3, %c0_4] : memref<128x128xf32, #tpu.memory_space<vmem>>, vector<128x128xf32>
    %9 = vector.extract_strided_slice %7 {offsets = [0, 0], sizes = [8, 128], strides = [1, 1]} : vector<64x128xf32> to vector<8x128xf32>
    %10 = math.tanh %9 : vector<8x128xf32>
    %11 = vector.extract_strided_slice %7 {offsets = [8, 0], sizes = [8, 128], strides = [1, 1]} : vector<64x128xf32> to vector<8x128xf32>
    %cst_5 = arith.constant dense<0.000000e+00> : vector<8x128xf32>
    %12 = tpu.matmul %10, %8, %cst_5 {dimension_numbers = #tpu.dot_dimension_numbers<[1], [0], [0], [1], [0, 0, 1, 1], [], []>} : vector<8x128xf32>, vector<128x128xf32>, vector<8x128xf32> -> vector<8x128xf32>
    %13 = arith.addf %11, %12 : vector<8x128xf32>
    %14 = math.tanh %13 : vector<8x128xf32>
    %15 = vector.extract_strided_slice %7 {offsets = [16, 0], sizes = [8, 128], strides = [1, 1]} : vector<64x128xf32> to vector<8x128xf32>
    %cst_6 = arith.constant dense<0.000000e+00> : vector<8x128xf32>
    %16 = tpu.matmul %14, %8, %cst_6 {dimension_numbers = #tpu.dot_dimension_numbers<[1], [0], [0], [1], [0, 0, 1, 1], [], []>} : vector<8x128xf32>, vector<128x128xf32>, vector<8x128xf32> -> vector<8x128xf32>
    %17 = arith.addf %15, %16 : vector<8x128xf32>
    %18 = math.tanh %17 : vector<8x128xf32>
    %19 = vector.extract_strided_slice %7 {offsets = [24, 0], sizes = [8, 128], strides = [1, 1]} : vector<64x128xf32> to vector<8x128xf32>
    %cst_7 = arith.constant dense<0.000000e+00> : vector<8x128xf32>
    %20 = tpu.matmul %18, %8, %cst_7 {dimension_numbers = #tpu.dot_dimension_numbers<[1], [0], [0], [1], [0, 0, 1, 1], [], []>} : vector<8x128xf32>, vector<128x128xf32>, vector<8x128xf32> -> vector<8x128xf32>
    %21 = arith.addf %19, %20 : vector<8x128xf32>
    %22 = math.tanh %21 : vector<8x128xf32>
    %23 = vector.extract_strided_slice %7 {offsets = [32, 0], sizes = [8, 128], strides = [1, 1]} : vector<64x128xf32> to vector<8x128xf32>
    %cst_8 = arith.constant dense<0.000000e+00> : vector<8x128xf32>
    %24 = tpu.matmul %22, %8, %cst_8 {dimension_numbers = #tpu.dot_dimension_numbers<[1], [0], [0], [1], [0, 0, 1, 1], [], []>} : vector<8x128xf32>, vector<128x128xf32>, vector<8x128xf32> -> vector<8x128xf32>
    %25 = arith.addf %23, %24 : vector<8x128xf32>
    %26 = math.tanh %25 : vector<8x128xf32>
    %27 = vector.extract_strided_slice %7 {offsets = [40, 0], sizes = [8, 128], strides = [1, 1]} : vector<64x128xf32> to vector<8x128xf32>
    %cst_9 = arith.constant dense<0.000000e+00> : vector<8x128xf32>
    %28 = tpu.matmul %26, %8, %cst_9 {dimension_numbers = #tpu.dot_dimension_numbers<[1], [0], [0], [1], [0, 0, 1, 1], [], []>} : vector<8x128xf32>, vector<128x128xf32>, vector<8x128xf32> -> vector<8x128xf32>
    %29 = arith.addf %27, %28 : vector<8x128xf32>
    %30 = math.tanh %29 : vector<8x128xf32>
    %31 = vector.extract_strided_slice %7 {offsets = [48, 0], sizes = [8, 128], strides = [1, 1]} : vector<64x128xf32> to vector<8x128xf32>
    %cst_10 = arith.constant dense<0.000000e+00> : vector<8x128xf32>
    %32 = tpu.matmul %30, %8, %cst_10 {dimension_numbers = #tpu.dot_dimension_numbers<[1], [0], [0], [1], [0, 0, 1, 1], [], []>} : vector<8x128xf32>, vector<128x128xf32>, vector<8x128xf32> -> vector<8x128xf32>
    %33 = arith.addf %31, %32 : vector<8x128xf32>
    %34 = math.tanh %33 : vector<8x128xf32>
    %35 = vector.extract_strided_slice %7 {offsets = [56, 0], sizes = [8, 128], strides = [1, 1]} : vector<64x128xf32> to vector<8x128xf32>
    %cst_11 = arith.constant dense<0.000000e+00> : vector<8x128xf32>
    %36 = tpu.matmul %34, %8, %cst_11 {dimension_numbers = #tpu.dot_dimension_numbers<[1], [0], [0], [1], [0, 0, 1, 1], [], []>} : vector<8x128xf32>, vector<128x128xf32>, vector<8x128xf32> -> vector<8x128xf32>
    %37 = arith.addf %35, %36 : vector<8x128xf32>
    %38 = math.tanh %37 : vector<8x128xf32>
    %c0_12 = arith.constant 0 : index
    %c0_13 = arith.constant 0 : index
    %39 = vector.load %arg3[%c0_12, %c0_13] : memref<128x128xf32, #tpu.memory_space<vmem>>, vector<128x128xf32>
    %cst_14 = arith.constant dense<0.000000e+00> : vector<8x128xf32>
    %40 = tpu.matmul %38, %39, %cst_14 {dimension_numbers = #tpu.dot_dimension_numbers<[1], [0], [0], [1], [0, 0, 1, 1], [], []>} : vector<8x128xf32>, vector<128x128xf32>, vector<8x128xf32> -> vector<8x128xf32>
    %c0_15 = arith.constant 0 : index
    %c0_16 = arith.constant 0 : index
    %41 = vector.load %arg4[%c0_15, %c0_16] : memref<1x128xf32, #tpu.memory_space<vmem>>, vector<1x128xf32>
    %42 = vector.broadcast %41 : vector<1x128xf32> to vector<8x128xf32>
    %43 = arith.addf %40, %42 : vector<8x128xf32>
    %c0_17 = arith.constant 0 : index
    %c0_18 = arith.constant 0 : index
    %44 = vector.load %arg5[%c0_17, %c0_18] : memref<8x128xf32, #tpu.memory_space<vmem>>, vector<8x128xf32>
    tpu.vector_store %arg5[%c0_17, %c0_18], %43 {strides = array<i32>} : memref<8x128xf32, #tpu.memory_space<vmem>>, vector<8x128xf32>,
    return
  }
}

</mosaic_0001>

<bundles_post_ra>
// kernel: tpu_custom_call.1
= control target key start
LH: loop header
LB: loop body
LE: loop exit
PB: predicated region body
PF: predicated region fallthrough
CT: control target
= control target key end

     0   :  { %10 = vsyncpa [#allocation3], 0  ;;  %s770_s0 = inlined_call_operand.vmem [shape: s32[64,1], index: 0, kind: input, shape index: {}]   ;;  %s771_s1 = inlined_call_operand.vmem [shape: f32[16,128], index: 1, kind: input, shape index: {}]   ;;  %s772_s2 = inlined_call_operand.hbm [shape: f32[128,128], index: 2, kind: input, shape index: {}]   ;;  %s773_s3 = inlined_call_operand.hbm [shape: f32[128,128], index: 3, kind: input, shape index: {}]   ;;  %s774_s4 = inlined_call_operand.vmem [shape: f32[1,128], index: 4, kind: input, shape index: {}]   ;;  %s775_s5 = inlined_call_operand.hbm [shape: f32[8,128], index: 5, kind: output, shape index: {}]  }
   0x1   :  { %11 = vsyncpa [#allocation6], 0 }
   0x2   :  { %12 = vsyncpa [#allocation4], 0  ;;  %s21_s20 = sshll.u32 %s772_s2, 4  ;;  %s530_s21 = smov [#allocation2]   ;;  %s22_s20 = int_to_ptr.hbm [resolvable:$true] %s21_s20 }
   0x3   :  { %s23_s22 = sshll.u32 %s530_s21, 4  ;;  %s34_s25 = sshll.u32 %s773_s3, 4  ;;  %s24_s22 = int_to_ptr.vmem [resolvable:$true] %s23_s22  ;;  %s35_s25 = int_to_ptr.hbm [resolvable:$true] %s34_s25 }
   0x4   :  { %s531_s26 = smov 128   ;;  %s532_s27 = smov 8  }
   0x5   :  { %29 = dma.hbm_to_vmem [thread:$0]  %s22_s20, 2048, %s24_s22, [#allocation3], %s531_s26, %s531_s26, %s532_s27  }
   0x6   :  { %s533_s28 = smov [#allocation5]  }
   0x7   :  { %s36_s29 = sshll.u32 %s533_s28, 4  ;;  %s37_s29 = int_to_ptr.vmem [resolvable:$true] %s36_s29 }
   0x8   :  { %42 = dma.hbm_to_vmem [thread:$0]  %s35_s25, 2048, %s37_s29, [#allocation6], %s531_s26, %s531_s26, %s532_s27  }
   0x9   :  { %524 = dma.done.wait [#allocation3], 2048  }
   0xa   :  { %525 = vsyncadd [#allocation3], 4294965248 }
   0xb   :  { %526 = dma.done.wait [#allocation6], 2048  }
   0xc   :  { %527 = vsyncadd [#allocation6], 4294965248  ;;  %v534_v0 = vmov 0   ;;  %v53_v1 = vld [vmem:[%s770_s0] sm:$0xff]  ;;  %v55_v2 = vld [vmem:[%s770_s0 + $0x10] sm:$0xff]  ;;  %v61_v10 = vlaneseq  ;;  %vm113_vm0 = vcmask 130048  }
   0xd   :  { %432 = vset.pattern.permute.xlu0 %v534_v0  ;;  %433 = vset.pattern.permute.xlu1 %v534_v0  ;;  %v57_v3 = vld [vmem:[%s770_s0 + $0x20] sm:$0xff]  ;;  %v112_v4 = vld [vmem:[%s771_s1 + $0x8] sm:$0xff]  ;;  %v56_v6 = vld [vmem:[%s770_s0 + $0x18] sm:$0xff]  ;;  %v535_v13 = vmov 0.0   ;;  %s536_s23 = smov [#allocation7]   ;;  %s398_s27 = sshll.u32 %s775_s5, 4  ;;  %s399_s27 = int_to_ptr.hbm [resolvable:$true] %s398_s27 }
   0xe   :  { %434 = vset.pattern.permute.xlu2 %v534_v0  ;;  %64 = vperm.xlu0 %432, %v53_v1   ;;  %v54_v5 = vld [vmem:[%s770_s0 + $0x8] sm:$0xff]  ;;  %v59_v8 = vld [vmem:[%s770_s0 + $0x30] sm:$0xff]  ;;  %v111_v9 = vld [vmem:[%s771_s1] sm:$0xff]  ;;  %v600_v11 = vand.u32 127, %v61_v10  ;;  %s396_s24 = sshll.u32 %s536_s23, 4  ;;  %s397_s24 = int_to_ptr.vmem [resolvable:$true] %s396_s24 }
   0xf   :  { %70 = vperm.xlu1 %433, %v55_v2   ;;  %76 = vperm.xlu2 %434, %v57_v3   ;;  %v58_v7 = vld [vmem:[%s770_s0 + $0x28] sm:$0xff]  ;;  %v611_v20 = vld [vmem:[#allocation2 + $0x78] sm:$0xff]  ;;  %v613_v21 = vld [vmem:[#allocation2 + $0x70] sm:$0xff] }
  0x10   :  { %152 = vmatpush.msra.mxu0 %v112_v4  ;;  %196 = vmatpush.msra.mxu1 %v611_v20  ;;  %v618_v22 = vld [vmem:[#allocation2 + $0x68] sm:$0xff]  ;;  %v624_v23 = vld [vmem:[#allocation2 + $0x60] sm:$0xff]  ;;  %v631_v26 = vld [vmem:[#allocation2 + $0x58] sm:$0xff] }
  0x11   :  { %218 = vmatpush.msra.mxu2 %v611_v20  ;;  %240 = vmatpush.msra.mxu3 %v611_v20  ;;  %v638_v27 = vld [vmem:[#allocation2 + $0x50] sm:$0xff]  ;;  %v644_v28 = vld [vmem:[#allocation2 + $0x48] sm:$0xff]  ;;  %v650_v29 = vld [vmem:[#allocation2 + $0x40] sm:$0xff] }
  0x12   :  { %153 = vmatpush.msra.mxu0 %v111_v9  ;;  %197 = vmatpush.msra.mxu1 %v613_v21  ;;  %v657_v31 = vld [vmem:[#allocation2 + $0x38] sm:$0xff]  ;;  %v664_v33 = vld [vmem:[#allocation2 + $0x30] sm:$0xff]  ;;  %v670_v34 = vld [vmem:[#allocation2 + $0x28] sm:$0xff] }
  0x13   :  { %219 = vmatpush.msra.mxu2 %v613_v21  ;;  %241 = vmatpush.msra.mxu3 %v613_v21  ;;  %v676_v35 = vld [vmem:[#allocation2 + $0x20] sm:$0xff]  ;;  %v182_v39 = vld [vmem:[#allocation2 + $0x18] sm:$0xff]  ;;  %v695_v40 = vld [vmem:[#allocation2 + $0x10] sm:$0xff] }
  0x14   :  { %328 = vmatpush.msrb.mxu0 %v611_v20  ;;  %198 = vmatpush.msra.mxu1 %v618_v22  ;;  %v697_v41 = vld [vmem:[#allocation2 + $0x8] sm:$0xff]  ;;  %v701_v42 = vld [vmem:[#allocation2] sm:$0xff]  ;;  %v60_v43 = vld [vmem:[%s770_s0 + $0x38] sm:$0xff] }
  0x15   :  { %220 = vmatpush.msra.mxu2 %v618_v22  ;;  %242 = vmatpush.msra.mxu3 %v618_v22  ;;  %v365_v4 = vld [vmem:[#allocation5 + $0x78] sm:$0xff]  ;;  %v360_v9 = vld [vmem:[#allocation5 + $0x50] sm:$0xff]  ;;  %v359_v10 = vld [vmem:[#allocation5 + $0x48] sm:$0xff] }
  0x16   :  { %67 = vperm.xlu0 %432, %v54_v5   ;;  %329 = vmatpush.msrb.mxu0 %v613_v21  ;;  %v364_v5 = vld [vmem:[#allocation5 + $0x70] sm:$0xff] }
  0x17   :  { %73 = vperm.xlu1 %433, %v56_v6   ;;  %79 = vperm.xlu2 %434, %v58_v7   ;;  %v363_v6 = vld [vmem:[#allocation5 + $0x68] sm:$0xff]  ;;  %v362_v7 = vld [vmem:[#allocation5 + $0x60] sm:$0xff] }
  0x18   :  { %330 = vmatpush.msrb.mxu0 %v618_v22  ;;  %199 = vmatpush.msra.mxu1 %v624_v23 }
  0x19   :  { %221 = vmatpush.msra.mxu2 %v624_v23  ;;  %243 = vmatpush.msra.mxu3 %v624_v23 }
  0x1a   :  { %200 = vmatpush.msra.mxu1 %v631_v26  ;;  %331 = vmatpush.msrb.mxu0 %v624_v23 }
  0x1b   :  { %222 = vmatpush.msra.mxu2 %v631_v26  ;;  %244 = vmatpush.msra.mxu3 %v631_v26 }
  0x1c   :  { %201 = vmatpush.msra.mxu1 %v638_v27  ;;  %332 = vmatpush.msrb.mxu0 %v631_v26 }
  0x1d   :  { %223 = vmatpush.msra.mxu2 %v638_v27  ;;  %245 = vmatpush.msra.mxu3 %v638_v27 }
  0x1e   :  { %82 = vperm.xlu0 %432, %v59_v8   ;;  %202 = vmatpush.msra.mxu1 %v644_v28  ;;  %v361_v8 = vld [vmem:[#allocation5 + $0x58] sm:$0xff] }
  0x1f   :  { %224 = vmatpush.msra.mxu2 %v644_v28  ;;  %246 = vmatpush.msra.mxu3 %v644_v28 }
  0x20   :  { %333 = vmatpush.msrb.mxu0 %v638_v27  ;;  %203 = vmatpush.msra.mxu1 %v650_v29 }
  0x21   :  { %225 = vmatpush.msra.mxu2 %v650_v29  ;;  %247 = vmatpush.msra.mxu3 %v650_v29 }
  0x22   :  { %204 = vmatpush.msra.mxu1 %v657_v31  ;;  %334 = vmatpush.msrb.mxu0 %v644_v28 }
  0x23   :  { %226 = vmatpush.msra.mxu2 %v657_v31  ;;  %248 = vmatpush.msra.mxu3 %v657_v31 }
  0x24   :  { %205 = vmatpush.msra.mxu1 %v664_v33  ;;  %335 = vmatpush.msrb.mxu0 %v650_v29 }
  0x25   :  { %227 = vmatpush.msra.mxu2 %v664_v33  ;;  %249 = vmatpush.msra.mxu3 %v664_v33 }
  0x26   :  { %206 = vmatpush.msra.mxu1 %v670_v34  ;;  %336 = vmatpush.msrb.mxu0 %v657_v31 }
  0x27   :  { %228 = vmatpush.msra.mxu2 %v670_v34  ;;  %250 = vmatpush.msra.mxu3 %v670_v34 }
  0x28   :  { %207 = vmatpush.msra.mxu1 %v676_v35  ;;  %337 = vmatpush.msrb.mxu0 %v664_v33 }
  0x29   :  { %229 = vmatpush.msra.mxu2 %v676_v35  ;;  %251 = vmatpush.msra.mxu3 %v676_v35 }
  0x2a   :  { %338 = vmatpush.msrb.mxu0 %v670_v34  ;;  %208 = vmatpush.msra.mxu1 %v182_v39 }
  0x2b   :  { %230 = vmatpush.msra.mxu2 %v182_v39  ;;  %252 = vmatpush.msra.mxu3 %v182_v39 }
  0x2c   :  { %339 = vmatpush.msrb.mxu0 %v676_v35  ;;  %209 = vmatpush.msra.mxu1 %v695_v40 }
  0x2d   :  { %231 = vmatpush.msra.mxu2 %v695_v40  ;;  %253 = vmatpush.msra.mxu3 %v695_v40 }
  0x2e   :  { %340 = vmatpush.msrb.mxu0 %v182_v39  ;;  %210 = vmatpush.msra.mxu1 %v697_v41 }
  0x2f   :  { %232 = vmatpush.msra.mxu2 %v697_v41  ;;  %254 = vmatpush.msra.mxu3 %v697_v41 }
  0x30   :  { %341 = vmatpush.msrb.mxu0 %v695_v40  ;;  %211 = vmatpush.msra.mxu1 %v701_v42 }
  0x31   :  { %233 = vmatpush.msra.mxu2 %v701_v42  ;;  %255 = vmatpush.msra.mxu3 %v701_v42 }
  0x32   :  { %342 = vmatpush.msrb.mxu0 %v697_v41  ;;  %262 = vmatpush.msrb.mxu1 %v611_v20 }
  0x33   :  { %284 = vmatpush.msrb.mxu2 %v611_v20  ;;  %306 = vmatpush.msrb.mxu3 %v611_v20  ;;  %v353_v20 = vld [vmem:[#allocation5 + $0x18] sm:$0xff] }
  0x34   :  { %263 = vmatpush.msrb.mxu1 %v613_v21  ;;  %343 = vmatpush.msrb.mxu0 %v701_v42 }
  0x35   :  { %285 = vmatpush.msrb.mxu2 %v613_v21  ;;  %307 = vmatpush.msrb.mxu3 %v613_v21  ;;  %v352_v21 = vld [vmem:[#allocation5 + $0x10] sm:$0xff] }
  0x36   :  { %264 = vmatpush.msrb.mxu1 %v618_v22  ;;  %85 = vperm.xlu1 %433, %v60_v43  }
  0x37   :  { %286 = vmatpush.msrb.mxu2 %v618_v22  ;;  %308 = vmatpush.msrb.mxu3 %v618_v22  ;;  %v351_v22 = vld [vmem:[#allocation5 + $0x8] sm:$0xff] }
  0x38   :  { %265 = vmatpush.msrb.mxu1 %v624_v23 }
  0x39   :  { %287 = vmatpush.msrb.mxu2 %v624_v23  ;;  %309 = vmatpush.msrb.mxu3 %v624_v23  ;;  %v350_v23 = vld [vmem:[#allocation5] sm:$0xff] }
  0x3a   :  { %266 = vmatpush.msrb.mxu1 %v631_v26 }
  0x3b   :  { %288 = vmatpush.msrb.mxu2 %v631_v26  ;;  %310 = vmatpush.msrb.mxu3 %v631_v26 }
  0x3c   :  { %267 = vmatpush.msrb.mxu1 %v638_v27 }
  0x3d   :  { %289 = vmatpush.msrb.mxu2 %v638_v27  ;;  %311 = vmatpush.msrb.mxu3 %v638_v27 }
  0x3e   :  { %268 = vmatpush.msrb.mxu1 %v644_v28 }
  0x3f   :  { %290 = vmatpush.msrb.mxu2 %v644_v28  ;;  %312 = vmatpush.msrb.mxu3 %v644_v28  ;;  %v435_v28 = vld [vmem:[%s774_s4] ss:$0 sm:$0xff] }
  0x40   :  { %269 = vmatpush.msrb.mxu1 %v650_v29 }
  0x41   :  { %291 = vmatpush.msrb.mxu2 %v650_v29  ;;  %313 = vmatpush.msrb.mxu3 %v650_v29 }
  0x42   :  { %270 = vmatpush.msrb.mxu1 %v657_v31 }
  0x43   :  { %292 = vmatpush.msrb.mxu2 %v657_v31  ;;  %314 = vmatpush.msrb.mxu3 %v657_v31 }
  0x44   :  { %271 = vmatpush.msrb.mxu1 %v664_v33 }
  0x45   :  { %293 = vmatpush.msrb.mxu2 %v664_v33  ;;  %315 = vmatpush.msrb.mxu3 %v664_v33 }
  0x46   :  { %272 = vmatpush.msrb.mxu1 %v670_v34 }
  0x47   :  { %294 = vmatpush.msrb.mxu2 %v670_v34  ;;  %316 = vmatpush.msrb.mxu3 %v670_v34 }
  0x48   :  { %273 = vmatpush.msrb.mxu1 %v676_v35 }
  0x49   :  { %295 = vmatpush.msrb.mxu2 %v676_v35  ;;  %317 = vmatpush.msrb.mxu3 %v676_v35 }
  0x4a   :  { %274 = vmatpush.msrb.mxu1 %v182_v39 }
  0x4b   :  { %296 = vmatpush.msrb.mxu2 %v182_v39  ;;  %318 = vmatpush.msrb.mxu3 %v182_v39 }
  0x4c   :  { %275 = vmatpush.msrb.mxu1 %v695_v40 }
  0x4d   :  { %297 = vmatpush.msrb.mxu2 %v695_v40  ;;  %319 = vmatpush.msrb.mxu3 %v695_v40 }
  0x4e   :  { %276 = vmatpush.msrb.mxu1 %v697_v41 }
  0x4f   :  { %298 = vmatpush.msrb.mxu2 %v697_v41  ;;  %320 = vmatpush.msrb.mxu3 %v697_v41 }
  0x50   :  { %277 = vmatpush.msrb.mxu1 %v701_v42 }
  0x51   :  { %299 = vmatpush.msrb.mxu2 %v701_v42  ;;  %321 = vmatpush.msrb.mxu3 %v701_v42 }
  0x69   :  { %v77_v25 = vpop.permute.xlu2 %76 }
  0x6a   :  { %vm91_vm5 = vcmp.eq.s32.totalorder %v600_v11, %v77_v25 }
  0x6b   :  { %v413_v30 = vsel %vm91_vm5, 1.0, %v535_v13 }
  0x71   :  { %v80_v32 = vpop.permute.xlu2 %79 }
  0x72   :  { %vm92_vm6 = vcmp.eq.s32.totalorder %v600_v11, %v80_v32 }
  0x73   :  { %v414_v36 = vsel %vm92_vm6, 1.0, %v535_v13 }
  0x80   :  { %v65_v12 = vpop.permute.xlu0 %64 }
  0x81   :  { %vm87_vm1 = vcmp.eq.s32.totalorder %v600_v11, %v65_v12  ;;  %v71_v16 = vpop.permute.xlu1 %70  ;;  %v357_v12 = vld [vmem:[#allocation5 + $0x38] sm:$0xff] }
  0x82   :  { %v409_v14 = vsel %vm87_vm1, 1.0, %v535_v13  ;;  %vm89_vm3 = vcmp.eq.s32.totalorder %v600_v11, %v71_v16 }
  0x83   :  { %417 = vmatmul.msk.f32.vlgmr.msra.gmra.mxu0 %vm113_vm0, %v409_v14  ;;  %v411_v18 = vsel %vm89_vm3, 1.0, %v535_v13  ;;  %v355_v14 = vld [vmem:[#allocation5 + $0x28] sm:$0xff] }
  0x88   :  { %v68_v15 = vpop.permute.xlu0 %67 }
  0x89   :  { %vm88_vm2 = vcmp.eq.s32.totalorder %v600_v11, %v68_v15  ;;  %v74_v19 = vpop.permute.xlu1 %73 }
  0x8a   :  { %v410_v17 = vsel %vm88_vm2, 1.0, %v535_v13  ;;  %vm90_vm4 = vcmp.eq.s32.totalorder %v600_v11, %v74_v19  ;;  %v354_v19 = vld [vmem:[#allocation5 + $0x20] sm:$0xff] }
  0x8b   :  { %418 = vmatmul.msk.f32.gmra.mxu0 %vm113_vm0, %v410_v17  ;;  %v412_v24 = vsel %vm90_vm4, 1.0, %v535_v13 }
  0x90   :  { %v83_v37 = vpop.permute.xlu0 %82 }
  0x91   :  { %vm93_vm7 = vcmp.eq.s32.totalorder %v600_v11, %v83_v37 }
  0x92   :  { %v415_v38 = vsel %vm93_vm7, 1.0, %v535_v13 }
  0x93   :  { %419 = vmatmul.msk.f32.gmra.mxu0 %vm113_vm0, %v411_v18 }
  0x9b   :  { %420 = vmatmul.msk.f32.gmra.mxu0 %vm113_vm0, %v412_v24 }
  0xa3   :  { %421 = vmatmul.msk.f32.gmra.mxu0 %vm113_vm0, %v413_v30 }
  0xa8   :  { %v86_v46 = vpop.permute.xlu1 %85 }
  0xa9   :  { %vm94_vm8 = vcmp.eq.s32.totalorder %v600_v11, %v86_v46  ;;  %v358_v11 = vld [vmem:[#allocation5 + $0x40] sm:$0xff] }
  0xaa   :  { %v416_v47 = vsel %vm94_vm8, 1.0, %v535_v13  ;;  %v356_v13 = vld [vmem:[#allocation5 + $0x30] sm:$0xff] }
  0xab   :  { %422 = vmatmul.msk.f32.gmra.mxu0 %vm113_vm0, %v414_v36 }
  0xb3   :  { %423 = vmatmul.msk.f32.gmra.mxu0 %vm113_vm0, %v415_v38 }
  0xbb   :  { %424 = vmatmul.msk.f32.gmra.mxu0 %vm113_vm0, %v416_v47 }
 0x100   :  { %v155_v44 = vpop.f32.mrf.mxu0 }
 0x101   :  { %436 = vtanh.f32 %v155_v44 }
 0x107   :  { %v437_v45 = vpop.eup %436 }
 0x108   :  { %212 = vmatmul.f32.vlgmr.msra.gmra.mxu1 %v437_v45  ;;  %v158_v48 = vpop.f32.mrf.mxu0 }
 0x109   :  { %370 = vmatpush.msra.mxu1 %v365_v4 }
 0x10b   :  { %371 = vmatpush.msra.mxu1 %v364_v5 }
 0x10d   :  { %372 = vmatpush.msra.mxu1 %v363_v6 }
 0x10f   :  { %373 = vmatpush.msra.mxu1 %v362_v7 }
 0x110   :  { %v161_v52 = vpop.f32.mrf.mxu0 }
 0x111   :  { %374 = vmatpush.msra.mxu1 %v361_v8 }
 0x113   :  { %375 = vmatpush.msra.mxu1 %v360_v9 }
 0x115   :  { %376 = vmatpush.msra.mxu1 %v359_v10 }
 0x117   :  { %377 = vmatpush.msra.mxu1 %v358_v11 }
 0x118   :  { %v164_v56 = vpop.f32.mrf.mxu0 }
 0x119   :  { %378 = vmatpush.msra.mxu1 %v357_v12 }
 0x11b   :  { %379 = vmatpush.msra.mxu1 %v356_v13 }
 0x11d   :  { %380 = vmatpush.msra.mxu1 %v355_v14 }
 0x11f   :  { %381 = vmatpush.msra.mxu1 %v354_v19 }
 0x120   :  { %v167_v60 = vpop.f32.mrf.mxu0 }
 0x121   :  { %382 = vmatpush.msra.mxu1 %v353_v20 }
 0x123   :  { %383 = vmatpush.msra.mxu1 %v352_v21 }
 0x125   :  { %384 = vmatpush.msra.mxu1 %v351_v22 }
 0x127   :  { %385 = vmatpush.msra.mxu1 %v350_v23 }
 0x128   :  { %v170_v0 = vpop.f32.mrf.mxu0 }
 0x130   :  { %v173_v15 = vpop.f32.mrf.mxu0 }
 0x138   :  { %v176_v24 = vpop.f32.mrf.mxu0 }
 0x185   :  { %v213_v49 = vpop.f32.mrf.mxu1 }
 0x186   :  { %v216_v50 = vadd.f32 %v213_v49, %v158_v48 }
 0x188   :  { %438 = vtanh.f32 %v216_v50 }
 0x18e   :  { %v439_v51 = vpop.eup %438 }
 0x18f   :  { %234 = vmatmul.f32.vlgmr.msra.gmra.mxu2 %v439_v51 }
 0x212   :  { %v235_v53 = vpop.f32.mrf.mxu2 }
 0x213   :  { %v238_v54 = vadd.f32 %v235_v53, %v161_v52 }
 0x215   :  { %440 = vtanh.f32 %v238_v54 }
 0x21b   :  { %v441_v55 = vpop.eup %440 }
 0x21c   :  { %256 = vmatmul.f32.vlgmr.msra.gmra.mxu3 %v441_v55 }
 0x29f   :  { %v257_v57 = vpop.f32.mrf.mxu3 }
 0x2a0   :  { %v260_v58 = vadd.f32 %v257_v57, %v164_v56 }
 0x2a2   :  { %442 = vtanh.f32 %v260_v58 }
 0x2a8   :  { %v443_v59 = vpop.eup %442 }
 0x2a9   :  { %278 = vmatmul.f32.vlgmr.msrb.gmra.mxu1 %v443_v59 }
 0x326   :  { %v279_v61 = vpop.f32.mrf.mxu1 }
 0x327   :  { %v282_v62 = vadd.f32 %v279_v61, %v167_v60 }
 0x329   :  { %444 = vtanh.f32 %v282_v62 }
 0x32f   :  { %v445_v63 = vpop.eup %444 }
 0x330   :  { %300 = vmatmul.f32.vlgmr.msrb.gmra.mxu2 %v445_v63 }
 0x3b3   :  { %v301_v1 = vpop.f32.mrf.mxu2 }
 0x3b4   :  { %v304_v2 = vadd.f32 %v301_v1, %v170_v0 }
 0x3b6   :  { %446 = vtanh.f32 %v304_v2 }
 0x3bc   :  { %v447_v3 = vpop.eup %446 }
 0x3bd   :  { %322 = vmatmul.f32.vlgmr.msrb.gmra.mxu3 %v447_v3 }
 0x440   :  { %v323_v16 = vpop.f32.mrf.mxu3 }
 0x441   :  { %v326_v17 = vadd.f32 %v323_v16, %v173_v15 }
 0x443   :  { %448 = vtanh.f32 %v326_v17 }
 0x449   :  { %v449_v18 = vpop.eup %448 }
 0x44a   :  { %344 = vmatmul.f32.vlgmr.msrb.gmra.mxu0 %v449_v18 }
 0x4c7   :  { %v345_v25 = vpop.f32.mrf.mxu0 }
 0x4c8   :  { %v348_v26 = vadd.f32 %v345_v25, %v176_v24 }
 0x4ca   :  { %450 = vtanh.f32 %v348_v26 }
 0x4d0   :  { %v451_v27 = vpop.eup %450 }
 0x4d1   :  { %386 = vmatmul.f32.vlgmr.msra.gmra.mxu1 %v451_v27 }
 0x54e   :  { %v387_v29 = vpop.f32.mrf.mxu1 }
 0x54f   :  { %v388_v30 = vadd.f32 %v435_v28, %v387_v29 }
 0x551   :  { %390 = vst [vmem:[#allocation7] sm:$0xff] %v388_v30 }
 0x552   :  { %401 = dma.vmem_to_hbm [thread:$0]  %s397_s24, 128, %s399_s27, [#allocation4]  }
 0x553   :  { %528 = dma.done.wait [#allocation4], 128  }
 0x554   :  { %529 = vsyncadd [#allocation4], 4294967168 }
 0x555   :  { %406 = vsyncpa [#allocation3], 1 }
 0x556   :  { %407 = vsyncpa [#allocation6], 1 }
 0x557   :  { %408 = vsyncpa [#allocation4], 1 }

</bundles_post_ra>
